<compile_context>
chip_gen: v6e
topology: v6e:2x2x1
jax: 0.10.0
libtpu: 0.0.40
codegen_flags: <defaults>
</compile_context>

<pallas_src>
import math

import jax
import jax.numpy as jnp
from jax.experimental import pallas as pl
from jax.experimental.pallas import tpu as pltpu


def _round_up(n, m):
    return ((n + m - 1) // m) * m


def _linear_norm_bias_kernel(x_ref, wt_ref, b_ref, o_ref):
    x = x_ref[...]                                             # [tm, Cin]
    # MXU matmul with f32 accumulation (operands fed in their native dtype).
    y = jnp.dot(x, wt_ref[...], preferred_element_type=jnp.float32)  # [tm, tn]
    # Row L2 norm of the input -> rsqrt on the EUP, then one broadcast vmul.
    xf = x.astype(jnp.float32)
    inv_norm = jax.lax.rsqrt(jnp.sum(xf * xf, axis=1, keepdims=True))  # [tm, 1]
    # TODO(synk): no epsilon guard — an all-zero input row yields inf/NaN,
    # matching the PyTorch reference exactly.
    y = y * inv_norm + b_ref[...].astype(jnp.float32)          # [tm, tn]
    o_ref[...] = y.astype(o_ref.dtype)


def prepare_params(weight, bias):
    """One-time param prep: weight [Cout, Cin] -> wt [Cin, Cout_pad] (lane-dense),
    bias [Cout] -> [1, Cout_pad]. Do this at init, not per forward call."""
    Cout, Cin = weight.shape
    Cout_p = _round_up(Cout, 128)
    wt = weight.T                                              # [Cin, Cout]
    if Cout_p != Cout:
        wt = jnp.pad(wt, ((0, 0), (0, Cout_p - Cout)))
        bias = jnp.pad(bias, (0, Cout_p - Cout))
    return wt, bias.reshape(1, Cout_p), Cout


def linear_forward(x, wt, b2, out_channel):
    """x: [B, Cin], wt: [Cin, Cout_pad], b2: [1, Cout_pad] -> [B, out_channel]."""
    B, Cin = x.shape
    Cout_p = wt.shape[1]

    # Batch tile: multiple of 8 sublanes, capped so VMEM stays well under the
    # v7x 64 MiB / 32 MiB-scoped budget even with double buffering.
    tm = min(256, _round_up(B, 8))
    B_pad = _round_up(B, tm)
    if B_pad != B:
        # Pad with ones so padded rows have a nonzero norm (rows are sliced off).
        x = jnp.concatenate(
            [x, jnp.ones((B_pad - B, Cin), dtype=x.dtype)], axis=0)

    # Cout tile: lane-dense multiple of 128.
    tn = 256 if Cout_p % 256 == 0 else 128

    out = pl.pallas_call(
        _linear_norm_bias_kernel,
        out_shape=jax.ShapeDtypeStruct((B_pad, Cout_p), x.dtype),
        grid_spec=pltpu.PrefetchScalarGridSpec(
            num_scalar_prefetch=0,
            grid=(B_pad // tm, Cout_p // tn),
            in_specs=[
                pl.BlockSpec((tm, Cin), lambda i, j: (i, 0)),
                pl.BlockSpec((Cin, tn), lambda i, j: (0, j)),
                pl.BlockSpec((1, tn), lambda i, j: (0, j)),
            ],
            out_specs=pl.BlockSpec((tm, tn), lambda i, j: (i, j)),
        ),
        compiler_params=pltpu.CompilerParams(
            dimension_semantics=("parallel", "parallel")),
    )(x, wt, b2)

    return out[:B, :out_channel]


def init_params(key, in_channel, out_channel, dtype=jnp.float32):
    # nn.init.xavier_uniform_(weight, gain=0.01)
    gain = 0.01
    bound = gain * math.sqrt(6.0 / (in_channel + out_channel))
    k_w, k_b = jax.random.split(key)
    weight = jax.random.uniform(k_w, (out_channel, in_channel), dtype,
                                minval=-bound, maxval=bound)
    # nn.Linear default bias init: U(-1/sqrt(fan_in), 1/sqrt(fan_in))
    b_bound = 1.0 / math.sqrt(in_channel)
    bias = jax.random.uniform(k_b, (out_channel,), dtype,
                              minval=-b_bound, maxval=b_bound)
    return weight, bias


def reference_forward(x, weight, bias):
    y = x @ weight.T
    x_norm = jnp.sqrt(jnp.sum(x * x, axis=1, keepdims=True))
    y = y / x_norm
    return y + bias


if __name__ == "__main__":
    key = jax.random.PRNGKey(0)
    k_x, k_p = jax.random.split(key)

    B, Cin, Cout = 8, 32, 64
    x = jax.random.normal(k_x, (B, Cin), jnp.float32)
    weight, bias = init_params(k_p, Cin, Cout)

    # One-time param prep (pre-transpose + lane-dense padding).
    wt, b2, out_channel = prepare_params(weight, bias)

    y = linear_forward(x, wt, b2, out_channel)
    jax.block_until_ready(y)

    y_ref = reference_forward(x, weight, bias)
    assert y.shape == (B, Cout)
    assert jnp.allclose(y, y_ref, atol=1e-5, rtol=1e-5), "mismatch vs reference"

    print("KERNEL_OK")
</pallas_src>

<mosaic_0001>
module attributes {stable_mosaic.version = 11 : i64} {
  func.func @_linear_norm_bias_kernel(%arg0: i32, %arg1: i32, %arg2: memref<8x32xf32, #tpu.memory_space<vmem>>, %arg3: memref<32x128xf32, #tpu.memory_space<vmem>>, %arg4: memref<1x128xf32, #tpu.memory_space<vmem>>, %arg5: memref<8x128xf32, #tpu.memory_space<vmem>>) attributes {dimension_semantics = [#tpu.dimension_semantics<parallel>, #tpu.dimension_semantics<parallel>], iteration_bounds = array<i64: 1, 1>, scalar_prefetch = 0 : i64, scratch_operands = 0 : i64, tpu.core_type = #tpu.core_type<tc>, window_params = [{transform_indices = @transform_0, window_bounds = array<i64: 8, 32>}, {transform_indices = @transform_1, window_bounds = array<i64: 32, 128>}, {transform_indices = @transform_2, window_bounds = array<i64: 1, 128>}, {transform_indices = @transform_3, window_bounds = array<i64: 8, 128>}]} {
    %c0 = arith.constant 0 : index
    %c0_0 = arith.constant 0 : index
    %0 = vector.load %arg2[%c0, %c0_0] : memref<8x32xf32, #tpu.memory_space<vmem>>, vector<8x32xf32>
    %c0_1 = arith.constant 0 : index
    %c0_2 = arith.constant 0 : index
    %1 = vector.load %arg3[%c0_1, %c0_2] : memref<32x128xf32, #tpu.memory_space<vmem>>, vector<32x128xf32>
    %cst = arith.constant dense<0.000000e+00> : vector<8x128xf32>
    %2 = tpu.matmul %0, %1, %cst {dimension_numbers = #tpu.dot_dimension_numbers<[1], [0], [0], [1], [0, 0, 1, 1], [], []>} : vector<8x32xf32>, vector<32x128xf32>, vector<8x128xf32> -> vector<8x128xf32>
    %3 = arith.mulf %0, %0 : vector<8x32xf32>
    %cst_3 = arith.constant dense<0.000000e+00> : vector<8xf32>
    %4 = vector.multi_reduction <add>, %3, %cst_3 [1] : vector<8x32xf32> to vector<8xf32>
    %5 = vector.shape_cast %4 : vector<8xf32> to vector<8x1xf32>
    %6 = math.rsqrt %5 : vector<8x1xf32>
    %7 = vector.broadcast %6 : vector<8x1xf32> to vector<8x128xf32>
    %8 = arith.mulf %2, %7 : vector<8x128xf32>
    %c0_4 = arith.constant 0 : index
    %c0_5 = arith.constant 0 : index
    %9 = vector.load %arg4[%c0_4, %c0_5] : memref<1x128xf32, #tpu.memory_space<vmem>>, vector<1x128xf32>
    %10 = vector.broadcast %9 : vector<1x128xf32> to vector<8x128xf32>
    %11 = arith.addf %8, %10 : vector<8x128xf32>
    %c0_6 = arith.constant 0 : index
    %c0_7 = arith.constant 0 : index
    %12 = vector.load %arg5[%c0_6, %c0_7] : memref<8x128xf32, #tpu.memory_space<vmem>>, vector<8x128xf32>
    tpu.vector_store %arg5[%c0_6, %c0_7], %11 {strides = array<i32>} : memref<8x128xf32, #tpu.memory_space<vmem>>, vector<8x128xf32>,
    return
  }
  func.func @transform_0(%arg0: i32, %arg1: i32) -> (i32, i32) {
    %c0_i32 = arith.constant 0 : i32
    %c0_i32_0 = arith.constant 0 : i32
    return %arg0, %c0_i32 : i32, i32
  }
  func.func @transform_1(%arg0: i32, %arg1: i32) -> (i32, i32) {
    %c0_i32 = arith.constant 0 : i32
    %c0_i32_0 = arith.constant 0 : i32
    return %c0_i32, %arg1 : i32, i32
  }
  func.func @transform_2(%arg0: i32, %arg1: i32) -> (i32, i32) {
    %c0_i32 = arith.constant 0 : i32
    %c0_i32_0 = arith.constant 0 : i32
    return %c0_i32, %arg1 : i32, i32
  }
  func.func @transform_3(%arg0: i32, %arg1: i32) -> (i32, i32) {
    %c0_i32 = arith.constant 0 : i32
    return %arg0, %arg1 : i32, i32
  }
}

</mosaic_0001>

<bundles_post_ra>
// kernel: tpu_custom_call.1
= control target key start
LH: loop header
LB: loop body
LE: loop exit
PB: predicated region body
PF: predicated region fallthrough
CT: control target
= control target key end

     0   :  { %8 = vsyncpa [#allocation3], 0  ;;  %s283_s0 = inlined_call_operand.hbm [shape: f32[8,32], index: 0, kind: input, shape index: {}]   ;;  %s284_s1 = inlined_call_operand.hbm [shape: f32[32,128], index: 1, kind: input, shape index: {}]   ;;  %s285_s2 = inlined_call_operand.vmem [shape: f32[1,128], index: 2, kind: input, shape index: {}]   ;;  %s286_s3 = inlined_call_operand.hbm [shape: f32[8,128], index: 3, kind: output, shape index: {}]  }
   0x1   :  { %9 = vsyncpa [#allocation6], 0 }
   0x2   :  { %10 = vsyncpa [#allocation4], 0  ;;  %s244_s12 = smov [#allocation2]   ;;  %s245_s14 = smov [#allocation5]  }
   0x3   :  { %s17_s13 = sshll.u32 %s244_s12, 4  ;;  %s26_s15 = sshll.u32 %s245_s14, 4  ;;  %s18_s13 = int_to_ptr.vmem [resolvable:$true] %s17_s13  ;;  %s27_s15 = int_to_ptr.vmem [resolvable:$true] %s26_s15 }
   0x4   :  { %s186_s16 = scalar_lea.vmem %s18_s13, 128  ;;  %p191_p1 = scmp.lt.s32.totalorder %s18_s13, %s18_s13 }
   0x5   :  { %p187_p0 = scmp.ne.s32.totalorder %s18_s13, %s186_s16  ;;  %p192_p2 = scmp.lt.s32.totalorder %s186_s16, %s186_s16 }
   0x7   :  { %p193_p3 = por %p192_p2, %p191_p1 }
   0x9   :  { %p194_p4 = pnand %p193_p3, %p187_p0 }
   0xb   :  { %197 = shalt.err (!%p194_p4)
}
   0xc   :  { %20 = dma.hbm_to_vmem [thread:$0]  %s283_s0, 128, %s18_s13, [#allocation3]  }
   0xd   :  { %s206_s19 = scalar_lea.vmem %s27_s15, 512  ;;  %p211_p6 = scmp.lt.s32.totalorder %s27_s15, %s27_s15 }
   0xe   :  { %p207_p5 = scmp.ne.s32.totalorder %s27_s15, %s206_s19  ;;  %p212_p7 = scmp.lt.s32.totalorder %s206_s19, %s206_s19 }
  0x10   :  { %p213_p8 = por %p212_p7, %p211_p6 }
  0x12   :  { %p214_p9 = pnand %p213_p8, %p207_p5 }
  0x14   :  { %217 = shalt.err (!%p214_p9)
}
  0x15   :  { %s246_s20 = smov 128   ;;  %s247_s21 = smov 8  }
  0x16   :  { %32 = dma.hbm_to_vmem [thread:$0]  %s284_s1, 512, %s27_s15, [#allocation6], %s246_s20, %s246_s20, %s247_s21  }
  0x17   :  { %238 = dma.done.wait [#allocation3], 128  }
  0x18   :  { %239 = vsyncadd [#allocation3], 4294967168 }
  0x19   :  { %240 = dma.done.wait [#allocation6], 512  }
  0x1a   :  { %241 = vsyncadd [#allocation6], 4294966784  ;;  %v248_v0 = vmov 0.0   ;;  %vm249_vm0 = vmmov 0   ;;  %v45_v1 = vld [vmem:[#allocation5 + $0x18] sm:$0xff]  ;;  %v44_v2 = vld [vmem:[#allocation5 + $0x10] sm:$0xff] }
  0x1b   :  { %158 = vmatprep.subr.mxu0 %v248_v0  ;;  %166 = vmatprep.mubr.msk.f32.mxu0 %vm249_vm0, %v248_v0  ;;  %v41_v3 = vld [vmem:[#allocation2] sm:$0xff]  ;;  %v43_v4 = vld [vmem:[#allocation5 + $0x8] sm:$0xff]  ;;  %vm46_vm1 = vcmask 261120   ;;  %v42_v6 = vld [vmem:[#allocation5] sm:$0xff]  ;;  %s250_s24 = smov [#allocation7]  }
  0x1c   :  { %159 = vmatpush3.msra.mxu0 %v45_v1  ;;  %v120_v5 = vmul.f32 %v41_v3, %v41_v3  ;;  %v152_v11 = vld [vmem:[%s285_s2] ss:$0 sm:$0xff]  ;;  %s141_s25 = sshll.u32 %s250_s24, 4  ;;  %s142_s25 = int_to_ptr.vmem [resolvable:$true] %s141_s25 }
  0x1d   :  { %160 = vmatprep.subr.mxu0 %v248_v0  ;;  %s218_s26 = scalar_lea.vmem %s142_s25, 128  ;;  %p223_p11 = scmp.lt.s32.totalorder %s142_s25, %s142_s25 }
  0x1e   :  { %161 = vmatpush3.msra.mxu0 %v44_v2  ;;  %v121_v7 = vsel %vm46_vm1, %v120_v5, 0.0  ;;  %p219_p10 = scmp.ne.s32.totalorder %s142_s25, %s218_s26  ;;  %p224_p12 = scmp.lt.s32.totalorder %s218_s26, %s218_s26 }
  0x1f   :  { %162 = vmatprep.subr.mxu0 %v248_v0  ;;  %122 = vadd.xlane.f32.xlu0 %v121_v7 }
  0x20   :  { %163 = vmatpush3.msra.mxu0 %v43_v4  ;;  %p225_p13 = por %p224_p12, %p223_p11 }
  0x21   :  { %164 = vmatprep.subr.mxu0 %v248_v0 }
  0x22   :  { %165 = vmatpush3.msra.mxu0 %v42_v6  ;;  %p226_p0 = pnand %p225_p13, %p219_p10 }
  0x23   :  { %167 = vmatmul.mubr.msk.f32.vlgmr.msra.gmra.mxu0 %vm46_vm1, %v41_v3 }
  0xa8   :  { %v123_v8 = vpop.xlane.xlu0 %122 }
  0xa9   :  { %176 = vrsqrt.f32 %v123_v8 }
  0xb6   :  { %v177_v9 = vpop.eup %176 }
  0xe3   :  { %v116_v10 = vpop.f32.mrf.mxu0 }
  0xe4   :  { %v125_v12 = vmul.f32 %v177_v9, %v116_v10 }
  0xe5   :  { %v168_v13 = vpop.f32.mrf.mxu0 }
  0xe6   :  { %v133_v14 = vadd.f32 %v152_v11, %v125_v12 }
  0xe8   :  { %134 = vst [vmem:[#allocation7] sm:$0xff] %v133_v14 }
  0xe9   :  { %229 = shalt.err (!%p226_p0)
}
  0xea   :  { %144 = dma.vmem_to_hbm [thread:$0]  %s142_s25, 128, %s286_s3, [#allocation4]  }
  0xeb   :  { %242 = dma.done.wait [#allocation4], 128  }
  0xec   :  { %243 = vsyncadd [#allocation4], 4294967168 }
  0xed   :  { %148 = vsyncpa [#allocation3], 1 }
  0xee   :  { %149 = vsyncpa [#allocation6], 1 }
  0xef   :  { %150 = vsyncpa [#allocation4], 1 }

</bundles_post_ra>
